<compile_context>
chip_gen: v5e
topology: v5e:2x2
jax: 0.10.0
libtpu: 0.0.40
codegen_flags: <defaults>
</compile_context>

<pallas_src>
import functools

import jax
import jax.numpy as jnp
from jax.experimental import pallas as pl
from jax.experimental.pallas import tpu as pltpu


def _round_up(n: int, m: int) -> int:
    return ((n + m - 1) // m) * m


def dqn_kernel(x_ref, w1_ref, b1_ref, w2_ref, b2_ref, w3_ref, b3_ref, o_ref):
    # x_ref: (TB, K_pad) bf16 batch tile. Weights/biases are full arrays,
    # VMEM-resident (constant index_map). MXU matmuls: bf16 in, f32 accumulate.
    x = x_ref[...]
    h1 = jnp.dot(x, w1_ref[...], preferred_element_type=jnp.float32) + b1_ref[...]
    h1 = jnp.maximum(h1, 0.0).astype(jnp.bfloat16)   # ReLU/bias in f32, bf16 for MXU
    h2 = jnp.dot(h1, w2_ref[...], preferred_element_type=jnp.float32) + b2_ref[...]
    h2 = jnp.maximum(h2, 0.0).astype(jnp.bfloat16)
    q = jnp.dot(h2, w3_ref[...], preferred_element_type=jnp.float32) + b3_ref[...]
    o_ref[...] = q.astype(o_ref.dtype)               # lane-dense (128-wide) f32 store


@functools.partial(jax.jit, static_argnames=("block_b",))
def dqn_forward(x, params, *, block_b=512):
    """x: [B, state_size] f32. Returns Q-values [B, action_size] f32."""
    w1, b1, w2, b2, w3, b3 = (params[k] for k in ("w1", "b1", "w2", "b2", "w3", "b3"))
    B, S = x.shape
    H1 = w1.shape[1]            # 256
    H2 = w2.shape[1]            # 128
    A = w3.shape[1]             # action_size

    # Wrapper-side padding: K of first matmul -> 128 lanes, output lanes -> 128.
    K_pad = _round_up(S, 128)
    N_pad = _round_up(A, 128)
    # Batch tile: multiple of 16 (bf16 sublane packing); 512 for real batches.
    TB = min(block_b, _round_up(B, 16))
    B_pad = _round_up(B, TB)

    bf16 = jnp.bfloat16
    x_p = jnp.zeros((B_pad, K_pad), bf16).at[:B, :S].set(x.astype(bf16))
    w1_p = jnp.zeros((K_pad, H1), bf16).at[:S, :].set(w1.astype(bf16))
    w2_p = w2.astype(bf16)
    w3_p = jnp.zeros((H2, N_pad), bf16).at[:, :A].set(w3.astype(bf16))
    b1_p = b1.astype(jnp.float32)
    b2_p = b2.astype(jnp.float32)
    b3_p = jnp.zeros((1, N_pad), jnp.float32).at[:, :A].set(b3.astype(jnp.float32))

    grid = (B_pad // TB,)
    const = lambda i: (0, 0)    # weights/biases: same block every step -> resident

    flops = 2 * B_pad * (K_pad * H1 + H1 * H2 + H2 * N_pad)
    bytes_accessed = (
        B_pad * K_pad * 2                                   # x (bf16)
        + (K_pad * H1 + H1 * H2 + H2 * N_pad) * 2           # weights (bf16)
        + (H1 + H2 + N_pad) * 4                             # biases (f32)
        + B_pad * N_pad * 4                                 # output (f32)
    )

    out = pl.pallas_call(
        dqn_kernel,
        out_shape=jax.ShapeDtypeStruct((B_pad, N_pad), jnp.float32),
        grid_spec=pltpu.PrefetchScalarGridSpec(
            num_scalar_prefetch=0,
            grid=grid,
            in_specs=[
                pl.BlockSpec((TB, K_pad), lambda i: (i, 0)),   # x: streamed per tile
                pl.BlockSpec((K_pad, H1), const),              # w1 (resident)
                pl.BlockSpec((1, H1), const),                  # b1
                pl.BlockSpec((H1, H2), const),                 # w2
                pl.BlockSpec((1, H2), const),                  # b2
                pl.BlockSpec((H2, N_pad), const),              # w3 (lane-padded)
                pl.BlockSpec((1, N_pad), const),               # b3
            ],
            out_specs=pl.BlockSpec((TB, N_pad), lambda i: (i, 0)),
        ),
        compiler_params=pltpu.CompilerParams(
            dimension_semantics=("parallel",),   # shard batch tiles across v7x TCs
        ),
        cost_estimate=pl.CostEstimate(
            flops=flops, transcendentals=0, bytes_accessed=bytes_accessed
        ),
    )(x_p, w1_p, b1_p, w2_p, b2_p, w3_p, b3_p)

    return out[:B, :A]


def init_dqn_params(key, state_size, action_size):
    """PyTorch-style nn.Linear init (uniform +/- 1/sqrt(fan_in)).

    Weights stored [in, out] (transposed vs torch); biases stored [1, out].
    """
    dims = [(state_size, 256), (256, 128), (128, action_size)]
    params = {}
    for i, (fan_in, fan_out) in enumerate(dims, start=1):
        key, kw, kb = jax.random.split(key, 3)
        bound = 1.0 / jnp.sqrt(fan_in)
        params[f"w{i}"] = jax.random.uniform(
            kw, (fan_in, fan_out), jnp.float32, minval=-bound, maxval=bound
        )
        params[f"b{i}"] = jax.random.uniform(
            kb, (1, fan_out), jnp.float32, minval=-bound, maxval=bound
        )
    return params


def dqn_reference_f32(x, params):
    h1 = jnp.maximum(x @ params["w1"] + params["b1"], 0.0)
    h2 = jnp.maximum(h1 @ params["w2"] + params["b2"], 0.0)
    return h2 @ params["w3"] + params["b3"]


def dqn_reference_bf16(x, params):
    """Pure-JAX reference with the same bf16-input / f32-accumulate scheme as
    the kernel (tight numerical comparison)."""
    bf16 = jnp.bfloat16
    h1 = jnp.dot(x.astype(bf16), params["w1"].astype(bf16),
                 preferred_element_type=jnp.float32) + params["b1"]
    h1 = jnp.maximum(h1, 0.0).astype(bf16)
    h2 = jnp.dot(h1, params["w2"].astype(bf16),
                 preferred_element_type=jnp.float32) + params["b2"]
    h2 = jnp.maximum(h2, 0.0).astype(bf16)
    return jnp.dot(h2, params["w3"].astype(bf16),
                   preferred_element_type=jnp.float32) + params["b3"]


if __name__ == "__main__":
    state_size = 16
    action_size = 8

    key = jax.random.PRNGKey(0)
    key, kx_small, kx_big = jax.random.split(key, 3)
    params = init_dqn_params(key, state_size, action_size)

    # Small "acting" batch (latency-bound; correctness check only).
    x_small = jax.random.normal(kx_small, (2, state_size), jnp.float32)
    q_small = jax.block_until_ready(dqn_forward(x_small, params))

    # Larger batch exercising the batch grid (2 tiles of 512, padded from 600).
    x_big = jax.random.normal(kx_big, (600, state_size), jnp.float32)
    q_big = jax.block_until_ready(dqn_forward(x_big, params))

    for x, q in ((x_small, q_small), (x_big, q_big)):
        assert q.shape == (x.shape[0], action_size)
        q_match = dqn_reference_bf16(x, params)
        q_f32 = dqn_reference_f32(x, params)
        err_match = float(jnp.max(jnp.abs(q - q_match)))
        err_f32 = float(jnp.max(jnp.abs(q - q_f32)))
        assert jnp.allclose(q, q_match, atol=2e-3, rtol=2e-3), err_match
        assert jnp.allclose(q, q_f32, atol=5e-2, rtol=5e-2), err_f32

    print("KERNEL_OK")
</pallas_src>

<mosaic_0001>
module attributes {stable_mosaic.version = 11 : i64} {
  func.func @dqn_kernel(%arg0: i32, %arg1: memref<16x128xbf16, #tpu.memory_space<vmem>>, %arg2: memref<128x256xbf16, #tpu.memory_space<vmem>>, %arg3: memref<1x256xf32, #tpu.memory_space<vmem>>, %arg4: memref<256x128xbf16, #tpu.memory_space<vmem>>, %arg5: memref<1x128xf32, #tpu.memory_space<vmem>>, %arg6: memref<128x128xbf16, #tpu.memory_space<vmem>>, %arg7: memref<1x128xf32, #tpu.memory_space<vmem>>, %arg8: memref<16x128xf32, #tpu.memory_space<vmem>>) attributes {dimension_semantics = [#tpu.dimension_semantics<parallel>], iteration_bounds = array<i64: 1>, scalar_prefetch = 0 : i64, scratch_operands = 0 : i64, tpu.core_type = #tpu.core_type<tc>, window_params = [{transform_indices = @transform_0, window_bounds = array<i64: 16, 128>}, {pipeline_mode = #tpu.pipeline_mode<synchronous>, transform_indices = @transform_1, window_bounds = array<i64: 128, 256>}, {pipeline_mode = #tpu.pipeline_mode<synchronous>, transform_indices = @transform_2, window_bounds = array<i64: 1, 256>}, {pipeline_mode = #tpu.pipeline_mode<synchronous>, transform_indices = @transform_3, window_bounds = array<i64: 256, 128>}, {pipeline_mode = #tpu.pipeline_mode<synchronous>, transform_indices = @transform_4, window_bounds = array<i64: 1, 128>}, {pipeline_mode = #tpu.pipeline_mode<synchronous>, transform_indices = @transform_5, window_bounds = array<i64: 128, 128>}, {pipeline_mode = #tpu.pipeline_mode<synchronous>, transform_indices = @transform_6, window_bounds = array<i64: 1, 128>}, {transform_indices = @transform_7, window_bounds = array<i64: 16, 128>}]} {
    %c0 = arith.constant 0 : index
    %c0_0 = arith.constant 0 : index
    %0 = vector.load %arg1[%c0, %c0_0] : memref<16x128xbf16, #tpu.memory_space<vmem>>, vector<16x128xbf16>
    %c0_1 = arith.constant 0 : index
    %c0_2 = arith.constant 0 : index
    %1 = vector.load %arg2[%c0_1, %c0_2] : memref<128x256xbf16, #tpu.memory_space<vmem>>, vector<128x256xbf16>
    %cst = arith.constant dense<0.000000e+00> : vector<16x256xf32>
    %2 = tpu.matmul %0, %1, %cst {dimension_numbers = #tpu.dot_dimension_numbers<[1], [0], [0], [1], [0, 0, 1, 1], [], []>} : vector<16x128xbf16>, vector<128x256xbf16>, vector<16x256xf32> -> vector<16x256xf32>
    %c0_3 = arith.constant 0 : index
    %c0_4 = arith.constant 0 : index
    %3 = vector.load %arg3[%c0_3, %c0_4] : memref<1x256xf32, #tpu.memory_space<vmem>>, vector<1x256xf32>
    %4 = vector.broadcast %3 : vector<1x256xf32> to vector<16x256xf32>
    %5 = arith.addf %2, %4 : vector<16x256xf32>
    %cst_5 = arith.constant 0.000000e+00 : f32
    %6 = vector.broadcast %cst_5 : f32 to vector<16x256xf32>
    %7 = arith.maximumf %5, %6 : vector<16x256xf32>
    %8 = arith.truncf %7 : vector<16x256xf32> to vector<16x256xbf16>
    %c0_6 = arith.constant 0 : index
    %c0_7 = arith.constant 0 : index
    %9 = vector.load %arg4[%c0_6, %c0_7] : memref<256x128xbf16, #tpu.memory_space<vmem>>, vector<256x128xbf16>
    %cst_8 = arith.constant dense<0.000000e+00> : vector<16x128xf32>
    %10 = tpu.matmul %8, %9, %cst_8 {dimension_numbers = #tpu.dot_dimension_numbers<[1], [0], [0], [1], [0, 0, 1, 1], [], []>} : vector<16x256xbf16>, vector<256x128xbf16>, vector<16x128xf32> -> vector<16x128xf32>
    %c0_9 = arith.constant 0 : index
    %c0_10 = arith.constant 0 : index
    %11 = vector.load %arg5[%c0_9, %c0_10] : memref<1x128xf32, #tpu.memory_space<vmem>>, vector<1x128xf32>
    %12 = vector.broadcast %11 : vector<1x128xf32> to vector<16x128xf32>
    %13 = arith.addf %10, %12 : vector<16x128xf32>
    %cst_11 = arith.constant 0.000000e+00 : f32
    %14 = vector.broadcast %cst_11 : f32 to vector<16x128xf32>
    %15 = arith.maximumf %13, %14 : vector<16x128xf32>
    %16 = arith.truncf %15 : vector<16x128xf32> to vector<16x128xbf16>
    %c0_12 = arith.constant 0 : index
    %c0_13 = arith.constant 0 : index
    %17 = vector.load %arg6[%c0_12, %c0_13] : memref<128x128xbf16, #tpu.memory_space<vmem>>, vector<128x128xbf16>
    %cst_14 = arith.constant dense<0.000000e+00> : vector<16x128xf32>
    %18 = tpu.matmul %16, %17, %cst_14 {dimension_numbers = #tpu.dot_dimension_numbers<[1], [0], [0], [1], [0, 0, 1, 1], [], []>} : vector<16x128xbf16>, vector<128x128xbf16>, vector<16x128xf32> -> vector<16x128xf32>
    %c0_15 = arith.constant 0 : index
    %c0_16 = arith.constant 0 : index
    %19 = vector.load %arg7[%c0_15, %c0_16] : memref<1x128xf32, #tpu.memory_space<vmem>>, vector<1x128xf32>
    %20 = vector.broadcast %19 : vector<1x128xf32> to vector<16x128xf32>
    %21 = arith.addf %18, %20 : vector<16x128xf32>
    %c0_17 = arith.constant 0 : index
    %c0_18 = arith.constant 0 : index
    %22 = vector.load %arg8[%c0_17, %c0_18] : memref<16x128xf32, #tpu.memory_space<vmem>>, vector<16x128xf32>
    tpu.vector_store %arg8[%c0_17, %c0_18], %21 {strides = array<i32>} : memref<16x128xf32, #tpu.memory_space<vmem>>, vector<16x128xf32>,
    return
  }
  func.func @transform_0(%arg0: i32) -> (i32, i32) {
    %c0_i32 = arith.constant 0 : i32
    %c0_i32_0 = arith.constant 0 : i32
    return %arg0, %c0_i32 : i32, i32
  }
  func.func @transform_1(%arg0: i32) -> (i32, i32) {
    %c0_i32 = arith.constant 0 : i32
    %c0_i32_0 = arith.constant 0 : i32
    %c0_i32_1 = arith.constant 0 : i32
    return %c0_i32, %c0_i32_0 : i32, i32
  }
  func.func @transform_2(%arg0: i32) -> (i32, i32) {
    %c0_i32 = arith.constant 0 : i32
    %c0_i32_0 = arith.constant 0 : i32
    %c0_i32_1 = arith.constant 0 : i32
    return %c0_i32, %c0_i32_0 : i32, i32
  }
  func.func @transform_3(%arg0: i32) -> (i32, i32) {
    %c0_i32 = arith.constant 0 : i32
    %c0_i32_0 = arith.constant 0 : i32
    %c0_i32_1 = arith.constant 0 : i32
    return %c0_i32, %c0_i32_0 : i32, i32
  }
  func.func @transform_4(%arg0: i32) -> (i32, i32) {
    %c0_i32 = arith.constant 0 : i32
    %c0_i32_0 = arith.constant 0 : i32
    %c0_i32_1 = arith.constant 0 : i32
    return %c0_i32, %c0_i32_0 : i32, i32
  }
  func.func @transform_5(%arg0: i32) -> (i32, i32) {
    %c0_i32 = arith.constant 0 : i32
    %c0_i32_0 = arith.constant 0 : i32
    %c0_i32_1 = arith.constant 0 : i32
    return %c0_i32, %c0_i32_0 : i32, i32
  }
  func.func @transform_6(%arg0: i32) -> (i32, i32) {
    %c0_i32 = arith.constant 0 : i32
    %c0_i32_0 = arith.constant 0 : i32
    %c0_i32_1 = arith.constant 0 : i32
    return %c0_i32, %c0_i32_0 : i32, i32
  }
  func.func @transform_7(%arg0: i32) -> (i32, i32) {
    %c0_i32 = arith.constant 0 : i32
    %c0_i32_0 = arith.constant 0 : i32
    return %arg0, %c0_i32 : i32, i32
  }
}

</mosaic_0001>

<bundles_post_ra>
// kernel: dqn_forward.1
= control target key start
LH: loop header
LB: loop body
LE: loop exit
PB: predicated region body
PF: predicated region fallthrough
CT: control target
= control target key end

     0   :  { %s854_s1 = inlined_call_operand.vmem [shape: bf16[128,256], index: 1, kind: input, shape index: {}]   ;;  %s855_s3 = inlined_call_operand.vmem [shape: bf16[256,128], index: 3, kind: input, shape index: {}]   ;;  %s856_s0 = inlined_call_operand.vmem [shape: bf16[16,128], index: 0, kind: input, shape index: {}]   ;;  %s857_s4 = inlined_call_operand.vmem [shape: f32[1,128], index: 4, kind: input, shape index: {}]   ;;  %s858_s5 = inlined_call_operand.vmem [shape: bf16[128,128], index: 5, kind: input, shape index: {}]   ;;  %s859_s2 = inlined_call_operand.vmem [shape: f32[1,256], index: 2, kind: input, shape index: {}]   ;;  %s860_s6 = inlined_call_operand.vmem [shape: f32[1,128], index: 6, kind: input, shape index: {}]   ;;  %s861_s7 = inlined_call_operand.vmem [shape: f32[16,128], index: 7, kind: output, shape index: {}]  }
   0x1   :  { %v483_v0 = vld [vmem:[%s854_s1 + $0x70] sm:$0xf]  ;;  %v601_v1 = vld [vmem:[%s854_s1 + $0x74] sm:$0xf0]  ;;  %v600_v2 = vld [vmem:[%s854_s1 + $0x74] sm:$0xf] }
   0x2   :  { %v484_v3 = vor.u32 %v601_v1, %v483_v0  ;;  %v485_v4 = vld [vmem:[%s854_s1 + $0x78] sm:$0xf0]  ;;  %v475_v5 = vld [vmem:[%s854_s1 + $0x60] sm:$0xf]  ;;  %v599_v6 = vld [vmem:[%s854_s1 + $0x64] sm:$0xf0] }
   0x3   :  { %v488_v7 = vor.u32 %v600_v2, %v485_v4  ;;  %v598_v8 = vld [vmem:[%s854_s1 + $0x64] sm:$0xf]  ;;  %v477_v9 = vld [vmem:[%s854_s1 + $0x68] sm:$0xf0]  ;;  %v476_v10 = vor.u32 %v599_v6, %v475_v5  ;;  %v467_v12 = vld [vmem:[%s854_s1 + $0x50] sm:$0xf] }
   0x4   :  { %136 = vmatpush.bf16.msra.mxu0 %v484_v3  ;;  %v480_v11 = vor.u32 %v598_v8, %v477_v9  ;;  %v597_v13 = vld [vmem:[%s854_s1 + $0x54] sm:$0xf0]  ;;  %v596_v14 = vld [vmem:[%s854_s1 + $0x54] sm:$0xf]  ;;  %v469_v15 = vld [vmem:[%s854_s1 + $0x58] sm:$0xf0] }
   0x5   :  { %150 = vmatpush.bf16.msra.mxu1 %v488_v7  ;;  %v468_v16 = vor.u32 %v597_v13, %v467_v12  ;;  %v472_v17 = vor.u32 %v596_v14, %v469_v15  ;;  %v459_v18 = vld [vmem:[%s854_s1 + $0x40] sm:$0xf]  ;;  %v595_v19 = vld [vmem:[%s854_s1 + $0x44] sm:$0xf0]  ;;  %v594_v20 = vld [vmem:[%s854_s1 + $0x44] sm:$0xf] }
   0x6   :  { %v461_v21 = vld [vmem:[%s854_s1 + $0x48] sm:$0xf0]  ;;  %v460_v22 = vor.u32 %v595_v19, %v459_v18  ;;  %v609_v23 = vld [vmem:[%s855_s3 + $0x38] sm:$0xff]  ;;  %v451_v26 = vld [vmem:[%s854_s1 + $0x30] sm:$0xf] }
   0x7   :  { %v617_v24 = vld [vmem:[%s855_s3 + $0x78] sm:$0xff]  ;;  %v464_v25 = vor.u32 %v594_v20, %v461_v21  ;;  %v592_v28 = vld [vmem:[%s854_s1 + $0x34] sm:$0xf]  ;;  %302 = vmatpush.bf16.msra.mxu2 %v609_v23  ;;  %v443_v34 = vld [vmem:[%s854_s1 + $0x20] sm:$0xf] }
   0x8   :  { %137 = vmatpush.bf16.msra.mxu0 %v476_v10  ;;  %v593_v27 = vld [vmem:[%s854_s1 + $0x34] sm:$0xf0]  ;;  %v453_v29 = vld [vmem:[%s854_s1 + $0x38] sm:$0xf0]  ;;  %316 = vmatpush.bf16.msra.mxu3 %v617_v24  ;;  %v608_v30 = vld [vmem:[%s855_s3 + $0x30] sm:$0xff] }
   0x9   :  { %151 = vmatpush.bf16.msra.mxu1 %v480_v11  ;;  %v616_v31 = vld [vmem:[%s855_s3 + $0x70] sm:$0xff]  ;;  %v452_v32 = vor.u32 %v593_v27, %v451_v26  ;;  %v456_v33 = vor.u32 %v592_v28, %v453_v29  ;;  %v591_v35 = vld [vmem:[%s854_s1 + $0x24] sm:$0xf0]  ;;  %v590_v36 = vld [vmem:[%s854_s1 + $0x24] sm:$0xf] }
   0xa   :  { %v445_v37 = vld [vmem:[%s854_s1 + $0x28] sm:$0xf0]  ;;  %v444_v40 = vor.u32 %v591_v35, %v443_v34  ;;  %v435_v42 = vld [vmem:[%s854_s1 + $0x10] sm:$0xf]  ;;  %v589_v43 = vld [vmem:[%s854_s1 + $0x14] sm:$0xf0] }
   0xb   :  { %303 = vmatpush.bf16.msra.mxu2 %v608_v30  ;;  %v607_v38 = vld [vmem:[%s855_s3 + $0x28] sm:$0xff]  ;;  %v448_v41 = vor.u32 %v590_v36, %v445_v37  ;;  %v588_v44 = vld [vmem:[%s854_s1 + $0x14] sm:$0xf]  ;;  %v437_v45 = vld [vmem:[%s854_s1 + $0x18] sm:$0xf0]  ;;  %v436_v48 = vor.u32 %v589_v43, %v435_v42 }
   0xc   :  { %138 = vmatpush.bf16.msra.mxu0 %v468_v16  ;;  %317 = vmatpush.bf16.msra.mxu3 %v616_v31  ;;  %v615_v39 = vld [vmem:[%s855_s3 + $0x68] sm:$0xff]  ;;  %v606_v46 = vld [vmem:[%s855_s3 + $0x20] sm:$0xff]  ;;  %v440_v49 = vor.u32 %v588_v44, %v437_v45  ;;  %v605_v57 = vld [vmem:[%s855_s3 + $0x18] sm:$0xff] }
   0xd   :  { %152 = vmatpush.bf16.msra.mxu1 %v472_v17  ;;  %v614_v47 = vld [vmem:[%s855_s3 + $0x60] sm:$0xff]  ;;  %v587_v51 = vld [vmem:[%s854_s1 + $0x4] sm:$0xf0]  ;;  %v429_v53 = vld [vmem:[%s854_s1 + $0x8] sm:$0xf0] }
   0xe   :  { %v427_v50 = vld [vmem:[%s854_s1] sm:$0xf]  ;;  %v586_v52 = vld [vmem:[%s854_s1 + $0x4] sm:$0xf]  ;;  %v613_v58 = vld [vmem:[%s855_s3 + $0x58] sm:$0xff] }
   0xf   :  { %304 = vmatpush.bf16.msra.mxu2 %v607_v38  ;;  %v428_v54 = vor.u32 %v587_v51, %v427_v50  ;;  %v432_v55 = vor.u32 %v586_v52, %v429_v53  ;;  %v585_v56 = vld [vmem:[%s856_s0] sm:$0xff]  ;;  %v604_v59 = vld [vmem:[%s855_s3 + $0x10] sm:$0xff]  ;;  %v603_v61 = vld [vmem:[%s855_s3 + $0x8] sm:$0xff] }
  0x10   :  { %139 = vmatpush.bf16.msra.mxu0 %v460_v22  ;;  %318 = vmatpush.bf16.msra.mxu3 %v615_v39  ;;  %v612_v60 = vld [vmem:[%s855_s3 + $0x50] sm:$0xff]  ;;  %v611_v62 = vld [vmem:[%s855_s3 + $0x48] sm:$0xff]  ;;  %v602_v63 = vld [vmem:[%s855_s3] sm:$0xff] }
  0x11   :  { %153 = vmatpush.bf16.msra.mxu1 %v464_v25  ;;  %v610_v0 = vld [vmem:[%s855_s3 + $0x40] sm:$0xff]  ;;  %v625_v1 = vld [vmem:[%s858_s5 + $0x38] sm:$0xff]  ;;  %v624_v2 = vld [vmem:[%s858_s5 + $0x30] sm:$0xff] }
  0x12   :  { %v623_v3 = vld [vmem:[%s858_s5 + $0x28] sm:$0xff]  ;;  %v622_v4 = vld [vmem:[%s858_s5 + $0x20] sm:$0xff]  ;;  %v621_v22 = vld [vmem:[%s858_s5 + $0x18] sm:$0xff] }
  0x13   :  { %305 = vmatpush.bf16.msra.mxu2 %v606_v46  ;;  %v44_v5 = vld [vmem:[%s859_s2] sm:$0x3]  ;;  %v620_v23 = vld [vmem:[%s858_s5 + $0x10] sm:$0xff]  ;;  %v619_v24 = vld [vmem:[%s858_s5 + $0x8] sm:$0xff] }
  0x14   :  { %140 = vmatpush.bf16.msra.mxu0 %v452_v32  ;;  %319 = vmatpush.bf16.msra.mxu3 %v614_v47  ;;  %v46_v8 = vperm.slane %v44_v5, 0  ;;  %v47_v9 = vperm.slane %v44_v5, 1  ;;  %v618_v25 = vld [vmem:[%s858_s5] sm:$0xff] }
  0x15   :  { %154 = vmatpush.bf16.msra.mxu1 %v456_v33  ;;  %v626_v27 = vld [vmem:[%s857_s4] ss:$0 sm:$0xff] }
  0x16   :  { %v627_v38 = vld [vmem:[%s860_s6] ss:$0 sm:$0xff] }
  0x17   :  { %306 = vmatpush.bf16.msra.mxu2 %v605_v57 }
  0x18   :  { %141 = vmatpush.bf16.msra.mxu0 %v444_v40  ;;  %320 = vmatpush.bf16.msra.mxu3 %v613_v58 }
  0x19   :  { %155 = vmatpush.bf16.msra.mxu1 %v448_v41 }
  0x1b   :  { %307 = vmatpush.bf16.msra.mxu2 %v604_v59 }
  0x1c   :  { %142 = vmatpush.bf16.msra.mxu0 %v436_v48  ;;  %321 = vmatpush.bf16.msra.mxu3 %v612_v60 }
  0x1d   :  { %156 = vmatpush.bf16.msra.mxu1 %v440_v49 }
  0x1f   :  { %308 = vmatpush.bf16.msra.mxu2 %v603_v61 }
  0x20   :  { %143 = vmatpush.bf16.msra.mxu0 %v428_v54  ;;  %322 = vmatpush.bf16.msra.mxu3 %v611_v62 }
  0x21   :  { %157 = vmatpush.bf16.msra.mxu1 %v432_v55 }
  0x23   :  { %144 = vmatmul.bf16.vlgmr.msra.gmra.mxu0 %v585_v56  ;;  %309 = vmatpush.bf16.msra.mxu2 %v602_v63 }
  0x24   :  { %158 = vmatmul.bf16.vlgmr.msra.gmra.mxu1 %v585_v56  ;;  %323 = vmatpush.bf16.msra.mxu3 %v610_v0 }
  0x25   :  { %401 = vmatpush.bf16.msrb.mxu0 %v625_v1 }
  0x29   :  { %402 = vmatpush.bf16.msrb.mxu0 %v624_v2 }
  0x2d   :  { %403 = vmatpush.bf16.msrb.mxu0 %v623_v3 }
  0x31   :  { %404 = vmatpush.bf16.msrb.mxu0 %v622_v4 }
  0x35   :  { %405 = vmatpush.bf16.msrb.mxu0 %v621_v22 }
  0x39   :  { %406 = vmatpush.bf16.msrb.mxu0 %v620_v23 }
  0x3d   :  { %407 = vmatpush.bf16.msrb.mxu0 %v619_v24 }
  0x41   :  { %408 = vmatpush.bf16.msrb.mxu0 %v618_v25 }
  0xa0   :  { %v145_v6 = vpop.f32.mrf.mxu0 }
  0xa1   :  { %v159_v7 = vpop.f32.mrf.mxu1  ;;  %v146_v10 = vadd.f32 %v145_v6, %v46_v8 }
  0xa2   :  { %v160_v11 = vadd.f32 %v159_v7, %v47_v9 }
  0xa3   :  { %v164_v16 = vmax.f32 %v146_v10, 0.0 }
  0xa4   :  { %v165_v18 = vmax.f32 %v160_v11, 0.0 }
  0xa8   :  { %v147_v12 = vpop.f32.mrf.mxu0 }
  0xa9   :  { %v148_v13 = vadd.f32 %v147_v12, %v46_v8  ;;  %v161_v14 = vpop.f32.mrf.mxu1 }
  0xaa   :  { %v162_v15 = vadd.f32 %v161_v14, %v47_v9 }
  0xab   :  { %v166_v17 = vmax.f32 %v148_v13, 0.0 }
  0xac   :  { %v167_v19 = vmax.f32 %v162_v15, 0.0 }
  0xad   :  { %v168_v20 = vpack.c.bf16 %v166_v17, %v164_v16 }
  0xae   :  { %v169_v21 = vpack.c.bf16 %v167_v19, %v165_v18 }
  0xaf   :  { %310 = vmatmul.bf16.vlgmr.msra.gmra.mxu2 %v168_v20 }
  0xb0   :  { %324 = vmatmul.bf16.vlgmr.msra.gmra.mxu3 %v169_v21 }
 0x132   :  { %v311_v26 = vpop.f32.mrf.mxu2 }
 0x133   :  { %v325_v28 = vpop.f32.mrf.mxu3  ;;  %v312_v29 = vadd.f32 %v626_v27, %v311_v26 }
 0x135   :  { %v326_v31 = vadd.f32 %v325_v28, %v312_v29 }
 0x137   :  { %v330_v35 = vmax.f32 %v326_v31, 0.0 }
 0x13a   :  { %v313_v30 = vpop.f32.mrf.mxu2 }
 0x13b   :  { %v314_v32 = vadd.f32 %v626_v27, %v313_v30  ;;  %v327_v33 = vpop.f32.mrf.mxu3 }
 0x13d   :  { %v328_v34 = vadd.f32 %v327_v33, %v314_v32 }
 0x13f   :  { %v331_v36 = vmax.f32 %v328_v34, 0.0 }
 0x141   :  { %v332_v37 = vpack.c.bf16 %v331_v36, %v330_v35 }
 0x143   :  { %409 = vmatmul.bf16.vlgmr.msrb.gmra.mxu0 %v332_v37 }
 0x1c0   :  { %v410_v39 = vpop.f32.mrf.mxu0 }
 0x1c1   :  { %v411_v40 = vadd.f32 %v627_v38, %v410_v39 }
 0x1c3   :  { %415 = vst [vmem:[%s861_s7] sm:$0xff] %v411_v40 }
 0x1c8   :  { %v412_v41 = vpop.f32.mrf.mxu0 }
 0x1c9   :  { %v413_v42 = vadd.f32 %v627_v38, %v412_v41 }
 0x1cb   :  { %416 = vst [vmem:[%s861_s7 + $0x8] sm:$0xff] %v413_v42 }

</bundles_post_ra>
